<compile_context>
chip_gen: v7x
topology: tpu7x:2x2x1
jax: 0.10.0
libtpu: 0.0.40
codegen_flags: <defaults>
</compile_context>

<pallas_src>
import functools

import jax
import jax.numpy as jnp
from jax.experimental import pallas as pl
from jax.experimental.pallas import tpu as pltpu

_NEG = -1e30  # large-negative filler for masked classes (avoids inf-inf NaNs)


def _ce_row_loss_kernel(row_map_ref, valid_ref, logits_ref, labels_ref, loss_ref,
                        m_sc, l_sc, t_sc, *, num_classes, ragged):
    """Per-(row_tile, class_tile) step of streaming cross-entropy.

    Grid: (row_tiles [parallel], class_tiles [arbitrary, innermost]).
    Scalar prefetch: row_map (remapped row block per tile), valid (per-tile flag).
    Scratch (per row tile, carried across class tiles):
      m_sc: running row max, l_sc: running sum(exp(x - m)), t_sc: target logit.
    At the last class tile, writes per-row loss (0 for ignored rows / dead tiles).
    """
    i = pl.program_id(0)
    j = pl.program_id(1)
    j_last = pl.num_programs(1) - 1
    tile_valid = valid_ref[i] != 0

    @pl.when(tile_valid)
    def _compute():
        @pl.when(j == 0)
        def _init():
            m_sc[...] = jnp.full_like(m_sc, _NEG)
            l_sc[...] = jnp.zeros_like(l_sc)
            t_sc[...] = jnp.zeros_like(t_sc)

        x = logits_ref[...]                  # native dtype (bf16 stays bf16)
        labels = labels_ref[...]             # (TM, 1) int32
        tc = x.shape[-1]
        lane = jax.lax.broadcasted_iota(jnp.int32, x.shape, 1)   # local lane idx

        # Target logit: one-hot select is exact in the native dtype.  Labels in
        # other tiles / padded lanes / label == -1 never match a local lane, so
        # no class mask is needed here even on the ragged edge tile.
        local_target = labels - j * tc
        t_sc[...] += jnp.sum(
            jnp.where(lane == local_target, x, jnp.zeros_like(x)),
            axis=-1, keepdims=True).astype(jnp.float32)

        def update(x_for_max, x_f32):
            # Online logsumexp update (accumulation strictly in f32).
            tile_max = jnp.max(x_for_max, axis=-1, keepdims=True).astype(jnp.float32)
            m_prev = m_sc[...]
            m_new = jnp.maximum(m_prev, tile_max)
            # TODO(synk): the two lane reductions could go to the idle MXU
            # (p @ ones) on v7x; kept on the VPU to preserve f32 accumulation.
            l_sc[...] = (l_sc[...] * jnp.exp(m_prev - m_new)
                         + jnp.sum(jnp.exp(x_f32 - m_new), axis=-1, keepdims=True))
            m_sc[...] = m_new

        if ragged:
            # Only the last class tile has padded lanes; mask only there.
            is_edge = j == j_last

            @pl.when(is_edge)
            def _edge():
                ok = lane < (num_classes - j * tc)
                xf = jnp.where(ok, x.astype(jnp.float32), _NEG)
                update(xf, xf)

            @pl.when(jnp.logical_not(is_edge))
            def _full():
                update(x, x.astype(jnp.float32))
        else:
            update(x, x.astype(jnp.float32))

        @pl.when(j == j_last)
        def _finalize():
            lse = m_sc[...] + jnp.log(l_sc[...])
            valid_row = labels != -1          # ignore_index == -1
            loss_ref[...] = jnp.where(valid_row, lse - t_sc[...], 0.0)

    @pl.when(jnp.logical_and(jnp.logical_not(tile_valid), j == j_last))
    def _dead_tile():
        loss_ref[...] = jnp.zeros_like(loss_ref)


def _round_up(x, m):
    return (x + m - 1) // m * m


def _default_tiling(tile_rows, class_block, vmem_limit_bytes):
    """Per-generation tiling: v5e/v6e (128 MiB VMEM) get bigger class blocks and
    a 96 MiB scoped limit; v7x (64 MiB) stays capped with headroom for the f32
    whole-tile temporaries (input tiles are double-buffered by BlockSpec)."""
    try:
        vmem_cap = pltpu.get_tpu_info().vmem_capacity_bytes
    except Exception:
        vmem_cap = 64 * 1024 * 1024          # conservative (v7x-safe) fallback
    big_vmem = vmem_cap >= 100 * 1024 * 1024
    if tile_rows is None:
        tile_rows = 256
    if class_block is None:
        class_block = 8192 if big_vmem else 4096
    if vmem_limit_bytes is None:
        vmem_limit_bytes = (96 if big_vmem else 48) * 1024 * 1024
    return tile_rows, class_block, vmem_limit_bytes


def _cross_entropy_per_row(logits, labels, *, tile_rows=None, class_block=None,
                           vmem_limit_bytes=None):
    """Per-row CE loss (0 where label == -1) for logits [N, C], labels [N]."""
    n_orig, c = logits.shape
    labels = labels.astype(jnp.int32)

    if tile_rows is None or class_block is None or vmem_limit_bytes is None:
        tile_rows, class_block, vmem_limit_bytes = _default_tiling(
            tile_rows, class_block, vmem_limit_bytes)

    # Row tiling: multiple of 8 (sublane).  Only pad the logits in the
    # degenerate case N < tile_rows; otherwise the last row block reads Pallas
    # partial-block padding (unspecified garbage) for rows >= N.  That is safe
    # ONLY because those rows' labels are padded to -1 (loss forced to 0 by a
    # true select) and every in-kernel reduction is per-row.  Do NOT add
    # cross-row reductions inside the kernel without padding logits too.
    n = n_orig
    tm = min(tile_rows, _round_up(n, 8))
    if tm > n:
        logits = jnp.pad(logits, ((0, tm - n), (0, 0)))
        labels = jnp.pad(labels, (0, tm - n), constant_values=-1)
        n = tm
    n_pad = _round_up(n, tm)
    if n_pad != n:
        labels = jnp.pad(labels, (0, n_pad - n), constant_values=-1)

    # Class tiling: lane-dense block (multiple of 128) or the full class dim.
    # class_block is kept moderate so the whole-tile f32 exp temporaries fit
    # VMEM without in-kernel lane sub-chunking.
    tc = c if c <= class_block else class_block
    n_rt = n_pad // tm
    n_ct = pl.cdiv(c, tc)
    ragged = (c % tc) != 0

    labels2d = labels.reshape(n_pad, 1)

    # Per-row-tile validity + remapped row index so dead tiles (all labels -1)
    # repeat the previous block index -> Pallas elides their logits DMA.
    tile_valid = jnp.any(labels.reshape(n_rt, tm) != -1, axis=-1)
    tidx = jnp.arange(n_rt, dtype=jnp.int32)
    row_map = jnp.maximum(
        jax.lax.cummax(jnp.where(tile_valid, tidx, -1)), 0).astype(jnp.int32)
    valid_i32 = tile_valid.astype(jnp.int32)

    def logits_index_map(i, j, row_map_ref, valid_ref):
        live = valid_ref[i]                                   # int32 {0, 1}
        # Valid tile: (i, j).  Dead tile: repeat previous block (row_map, last j)
        # so consecutive grid steps keep the same block index (DMA elided).
        return (row_map_ref[i], j * live + (n_ct - 1) * (1 - live))

    kernel = functools.partial(_ce_row_loss_kernel, num_classes=c, ragged=ragged)

    per_row = pl.pallas_call(
        kernel,
        out_shape=jax.ShapeDtypeStruct((n_pad, 1), jnp.float32),
        grid_spec=pltpu.PrefetchScalarGridSpec(
            num_scalar_prefetch=2,
            grid=(n_rt, n_ct),
            in_specs=[
                pl.BlockSpec((tm, tc), logits_index_map),            # logits tile
                pl.BlockSpec((tm, 1), lambda i, j, rm, vd: (i, 0)),  # labels
            ],
            out_specs=pl.BlockSpec((tm, 1), lambda i, j, rm, vd: (i, 0)),
            scratch_shapes=[pltpu.VMEM((tm, 1), jnp.float32),   # running max
                            pltpu.VMEM((tm, 1), jnp.float32),   # running sum(exp)
                            pltpu.VMEM((tm, 1), jnp.float32)],  # target logit
        ),
        compiler_params=pltpu.CompilerParams(
            dimension_semantics=("parallel", "arbitrary"),
            vmem_limit_bytes=vmem_limit_bytes),
    )(row_map, valid_i32, logits, labels2d)
    return per_row[:n_orig, 0]


def bert_pretraining_criterion(prediction_scores, seq_relationship_score,
                               masked_lm_labels, next_sentence_labels, vocab_size):
    """JAX/Pallas equivalent of BertPretrainingCriterion.forward."""
    mlm_logits = prediction_scores.reshape(-1, vocab_size)   # bf16 stays bf16
    mlm_labels = masked_lm_labels.reshape(-1).astype(jnp.int32)

    per_row = _cross_entropy_per_row(mlm_logits, mlm_labels)
    mlm_cnt = jnp.sum((mlm_labels != -1).astype(jnp.float32))
    # NOTE: 0/0 -> NaN when every label is -1, matching PyTorch CrossEntropyLoss.
    masked_lm_loss = jnp.sum(per_row) / mlm_cnt

    # NSP head (C=2): plain XLA — a Pallas launch would be pure overhead here.
    nsp_logits = seq_relationship_score.reshape(-1, 2).astype(jnp.float32)
    nsp_labels = next_sentence_labels.reshape(-1).astype(jnp.int32)
    nsp_lse = jax.scipy.special.logsumexp(nsp_logits, axis=-1)
    safe = jnp.clip(nsp_labels, 0, 1)
    nsp_tgt = jnp.take_along_axis(nsp_logits, safe[:, None], axis=-1)[:, 0]
    nsp_valid = nsp_labels != -1
    nsp_rows = jnp.where(nsp_valid, nsp_lse - nsp_tgt, 0.0)
    next_sentence_loss = jnp.sum(nsp_rows) / jnp.sum(nsp_valid.astype(jnp.float32))

    return masked_lm_loss + next_sentence_loss


def _ref_ce_mean(logits, labels):
    """Pure-JAX reference (mean CE with ignore_index=-1)."""
    logits = logits.astype(jnp.float32)
    lse = jax.scipy.special.logsumexp(logits, axis=-1)
    safe = jnp.clip(labels, 0, logits.shape[-1] - 1)
    tgt = jnp.take_along_axis(logits, safe[:, None], axis=-1)[:, 0]
    valid = labels != -1
    return jnp.sum(jnp.where(valid, lse - tgt, 0.0)) / jnp.sum(valid.astype(jnp.float32))


if __name__ == "__main__":
    # Shapes implied by the forward: prediction_scores [B, S, V],
    # seq_relationship_score [B, 2], masked_lm_labels [B, S], next_sentence_labels [B].
    B, S, V = 2, 8, 128

    key = jax.random.PRNGKey(0)
    k1, k2, k3, k4 = jax.random.split(key, 4)

    prediction_scores = jax.random.normal(k1, (B, S, V), dtype=jnp.float32)
    seq_relationship_score = jax.random.normal(k2, (B, 2), dtype=jnp.float32)
    masked_lm_labels = jax.random.randint(k3, (B, S), 0, V, dtype=jnp.int32)
    masked_lm_labels = masked_lm_labels.at[0, 0].set(-1).at[1, 3].set(-1)
    next_sentence_labels = jax.random.randint(k4, (B,), 0, 2, dtype=jnp.int32)

    total_loss = bert_pretraining_criterion(
        prediction_scores, seq_relationship_score,
        masked_lm_labels, next_sentence_labels, V)
    total_loss = jax.block_until_ready(total_loss)

    ref = (_ref_ce_mean(prediction_scores.reshape(-1, V), masked_lm_labels.reshape(-1)) +
           _ref_ce_mean(seq_relationship_score.reshape(-1, 2), next_sentence_labels.reshape(-1)))
    assert jnp.allclose(total_loss, ref, rtol=1e-5, atol=1e-5), (total_loss, ref)

    # Check 2: ragged vocab (300 % 128 != 0), ragged row tiles, bf16 inputs
    # (only the last class tile pays the lane mask; pre-exp math stays bf16).
    N2, V2 = 40, 300
    k5, k6 = jax.random.split(k1)
    logits2 = jax.random.normal(k5, (N2, V2), dtype=jnp.float32).astype(jnp.bfloat16)
    labels2 = jax.random.randint(k6, (N2,), 0, V2, dtype=jnp.int32)
    labels2 = labels2.at[5].set(-1).at[17].set(-1)
    per_row2 = _cross_entropy_per_row(logits2, labels2, tile_rows=16, class_block=128,
                                      vmem_limit_bytes=32 * 1024 * 1024)
    loss2 = jnp.sum(per_row2) / jnp.sum((labels2 != -1).astype(jnp.float32))
    loss2 = jax.block_until_ready(loss2)
    ref2 = _ref_ce_mean(logits2, labels2)
    assert jnp.allclose(loss2, ref2, rtol=1e-3, atol=1e-3), (loss2, ref2)

    # Check 3: dead-row-tile skipping (whole tiles of ignore_index == -1,
    # including a dead leading tile) on the multi-class-tile non-ragged path.
    N3, V3, TM3 = 64, 384, 8
    k7, k8 = jax.random.split(k2)
    logits3 = jax.random.normal(k7, (N3, V3), dtype=jnp.float32)
    labels3 = jax.random.randint(k8, (N3,), 0, V3, dtype=jnp.int32)
    dead = jnp.zeros((N3,), dtype=bool)
    for t in (0, 3, 6):
        dead = dead.at[t * TM3:(t + 1) * TM3].set(True)
    labels3 = jnp.where(dead, -1, labels3)
    per_row3 = _cross_entropy_per_row(logits3, labels3, tile_rows=TM3, class_block=128,
                                      vmem_limit_bytes=32 * 1024 * 1024)
    loss3 = jnp.sum(per_row3) / jnp.sum((labels3 != -1).astype(jnp.float32))
    loss3 = jax.block_until_ready(loss3)
    ref3 = _ref_ce_mean(logits3, labels3)
    assert jnp.allclose(loss3, ref3, rtol=1e-5, atol=1e-5), (loss3, ref3)

    print("KERNEL_OK")
</pallas_src>

<mosaic_0001>
module attributes {stable_mosaic.version = 11 : i64} {
  func.func @_ce_row_loss_kernel(%arg0: i32, %arg1: i32, %arg2: memref<1xi32, #tpu.memory_space<smem>>, %arg3: memref<1xi32, #tpu.memory_space<smem>>, %arg4: memref<16x128xf32, #tpu.memory_space<vmem>>, %arg5: memref<16x1xi32, #tpu.memory_space<vmem>>, %arg6: memref<16x1xf32, #tpu.memory_space<vmem>>, %arg7: memref<16x1xf32, #tpu.memory_space<vmem>>, %arg8: memref<16x1xf32, #tpu.memory_space<vmem>>, %arg9: memref<16x1xf32, #tpu.memory_space<vmem>>) attributes {dimension_semantics = [#tpu.dimension_semantics<parallel>, #tpu.dimension_semantics<arbitrary>], iteration_bounds = array<i64: 1, 1>, scalar_prefetch = 2 : i64, scratch_operands = 3 : i64, tpu.core_type = #tpu.core_type<tc>, window_params = [{transform_indices = @transform_0, window_bounds = array<i64: 16, 128>}, {transform_indices = @transform_1, window_bounds = array<i64: 16, 1>}, {transform_indices = @transform_2, window_bounds = array<i64: 16, 1>}]} {
    %0 = arith.index_cast %arg0 : i32 to index
    %1 = memref.load %arg3[%0] : memref<1xi32, #tpu.memory_space<smem>>
    %c0_i32 = arith.constant 0 : i32
    %2 = arith.cmpi ne, %1, %c0_i32 : i32
    %3 = arith.extui %2 : i1 to i32
    %c0_i32_0 = arith.constant 0 : i32
    %4 = arith.cmpi ne, %3, %c0_i32_0 : i32
    scf.if %4 {
      %c0_i32_3 = arith.constant 0 : i32
      %10 = arith.cmpi eq, %arg1, %c0_i32_3 : i32
      %11 = arith.extui %10 : i1 to i32
      %c0_i32_4 = arith.constant 0 : i32
      %12 = arith.cmpi ne, %11, %c0_i32_4 : i32
      scf.if %12 {
        %cst_25 = arith.constant -1.000000e+30 : f32
        %47 = vector.broadcast %cst_25 : f32 to vector<16x1xf32>
        %c0_26 = arith.constant 0 : index
        %c0_27 = arith.constant 0 : index
        %48 = vector.load %arg7[%c0_26, %c0_27] : memref<16x1xf32, #tpu.memory_space<vmem>>, vector<16x1xf32>
        tpu.vector_store %arg7[%c0_26, %c0_27], %47 {strides = array<i32>} : memref<16x1xf32, #tpu.memory_space<vmem>>, vector<16x1xf32>,
        %cst_28 = arith.constant 0.000000e+00 : f32
        %49 = vector.broadcast %cst_28 : f32 to vector<16x1xf32>
        %c0_29 = arith.constant 0 : index
        %c0_30 = arith.constant 0 : index
        %50 = vector.load %arg8[%c0_29, %c0_30] : memref<16x1xf32, #tpu.memory_space<vmem>>, vector<16x1xf32>
        tpu.vector_store %arg8[%c0_29, %c0_30], %49 {strides = array<i32>} : memref<16x1xf32, #tpu.memory_space<vmem>>, vector<16x1xf32>,
        %cst_31 = arith.constant 0.000000e+00 : f32
        %51 = vector.broadcast %cst_31 : f32 to vector<16x1xf32>
        %c0_32 = arith.constant 0 : index
        %c0_33 = arith.constant 0 : index
        %52 = vector.load %arg9[%c0_32, %c0_33] : memref<16x1xf32, #tpu.memory_space<vmem>>, vector<16x1xf32>
        tpu.vector_store %arg9[%c0_32, %c0_33], %51 {strides = array<i32>} : memref<16x1xf32, #tpu.memory_space<vmem>>, vector<16x1xf32>,
      } else {
      }
      %c0 = arith.constant 0 : index
      %c0_5 = arith.constant 0 : index
      %13 = vector.load %arg4[%c0, %c0_5] : memref<16x128xf32, #tpu.memory_space<vmem>>, vector<16x128xf32>
      %c0_6 = arith.constant 0 : index
      %c0_7 = arith.constant 0 : index
      %14 = vector.load %arg5[%c0_6, %c0_7] : memref<16x1xi32, #tpu.memory_space<vmem>>, vector<16x1xi32>
      %15 = tpu.iota {dimensions = array<i32: 1>} : vector<16x128xi32>
      %c128_i32 = arith.constant 128 : i32
      %16 = arith.muli %arg1, %c128_i32 : i32
      %17 = vector.broadcast %16 : i32 to vector<16x1xi32>
      %18 = arith.subi %14, %17 : vector<16x1xi32>
      %c0_8 = arith.constant 0 : index
      %c0_9 = arith.constant 0 : index
      %19 = vector.load %arg9[%c0_8, %c0_9] : memref<16x1xf32, #tpu.memory_space<vmem>>, vector<16x1xf32>
      %20 = vector.broadcast %18 : vector<16x1xi32> to vector<16x128xi32>
      %21 = arith.cmpi eq, %15, %20 : vector<16x128xi32>
      %cst = arith.constant 0.000000e+00 : f32
      %22 = vector.broadcast %cst : f32 to vector<16x128xf32>
      %23 = arith.select %21, %13, %22 : vector<16x128xi1>, vector<16x128xf32>
      %cst_10 = arith.constant dense<0.000000e+00> : vector<16xf32>
      %24 = vector.multi_reduction <add>, %23, %cst_10 [1] : vector<16x128xf32> to vector<16xf32>
      %25 = vector.shape_cast %24 : vector<16xf32> to vector<16x1xf32>
      %26 = arith.addf %19, %25 : vector<16x1xf32>
      %c0_11 = arith.constant 0 : index
      %c0_12 = arith.constant 0 : index
      %27 = vector.load %arg9[%c0_11, %c0_12] : memref<16x1xf32, #tpu.memory_space<vmem>>, vector<16x1xf32>
      tpu.vector_store %arg9[%c0_11, %c0_12], %26 {strides = array<i32>} : memref<16x1xf32, #tpu.memory_space<vmem>>, vector<16x1xf32>,
      %cst_13 = arith.constant dense<0xFF800000> : vector<16xf32>
      %28 = vector.multi_reduction <maximumf>, %13, %cst_13 [1] : vector<16x128xf32> to vector<16xf32>
      %29 = vector.shape_cast %28 : vector<16xf32> to vector<16x1xf32>
      %c0_14 = arith.constant 0 : index
      %c0_15 = arith.constant 0 : index
      %30 = vector.load %arg7[%c0_14, %c0_15] : memref<16x1xf32, #tpu.memory_space<vmem>>, vector<16x1xf32>
      %31 = arith.maximumf %30, %29 : vector<16x1xf32>
      %c0_16 = arith.constant 0 : index
      %c0_17 = arith.constant 0 : index
      %32 = vector.load %arg8[%c0_16, %c0_17] : memref<16x1xf32, #tpu.memory_space<vmem>>, vector<16x1xf32>
      %33 = arith.subf %30, %31 : vector<16x1xf32>
      %34 = math.exp %33 : vector<16x1xf32>
      %35 = arith.mulf %32, %34 : vector<16x1xf32>
      %36 = vector.broadcast %31 : vector<16x1xf32> to vector<16x128xf32>
      %37 = arith.subf %13, %36 : vector<16x128xf32>
      %38 = math.exp %37 : vector<16x128xf32>
      %cst_18 = arith.constant dense<0.000000e+00> : vector<16xf32>
      %39 = vector.multi_reduction <add>, %38, %cst_18 [1] : vector<16x128xf32> to vector<16xf32>
      %40 = vector.shape_cast %39 : vector<16xf32> to vector<16x1xf32>
      %41 = arith.addf %35, %40 : vector<16x1xf32>
      %c0_19 = arith.constant 0 : index
      %c0_20 = arith.constant 0 : index
      %42 = vector.load %arg8[%c0_19, %c0_20] : memref<16x1xf32, #tpu.memory_space<vmem>>, vector<16x1xf32>
      tpu.vector_store %arg8[%c0_19, %c0_20], %41 {strides = array<i32>} : memref<16x1xf32, #tpu.memory_space<vmem>>, vector<16x1xf32>,
      %c0_21 = arith.constant 0 : index
      %c0_22 = arith.constant 0 : index
      %43 = vector.load %arg7[%c0_21, %c0_22] : memref<16x1xf32, #tpu.memory_space<vmem>>, vector<16x1xf32>
      tpu.vector_store %arg7[%c0_21, %c0_22], %31 {strides = array<i32>} : memref<16x1xf32, #tpu.memory_space<vmem>>, vector<16x1xf32>,
      %c0_i32_23 = arith.constant 0 : i32
      %44 = arith.cmpi eq, %arg1, %c0_i32_23 : i32
      %45 = arith.extui %44 : i1 to i32
      %c0_i32_24 = arith.constant 0 : i32
      %46 = arith.cmpi ne, %45, %c0_i32_24 : i32
      scf.if %46 {
        %c0_25 = arith.constant 0 : index
        %c0_26 = arith.constant 0 : index
        %47 = vector.load %arg7[%c0_25, %c0_26] : memref<16x1xf32, #tpu.memory_space<vmem>>, vector<16x1xf32>
        %c0_27 = arith.constant 0 : index
        %c0_28 = arith.constant 0 : index
        %48 = vector.load %arg8[%c0_27, %c0_28] : memref<16x1xf32, #tpu.memory_space<vmem>>, vector<16x1xf32>
        %49 = math.log %48 : vector<16x1xf32>
        %50 = arith.addf %47, %49 : vector<16x1xf32>
        %c-1_i32 = arith.constant -1 : i32
        %51 = vector.broadcast %c-1_i32 : i32 to vector<16x1xi32>
        %52 = arith.cmpi ne, %14, %51 : vector<16x1xi32>
        %c0_29 = arith.constant 0 : index
        %c0_30 = arith.constant 0 : index
        %53 = vector.load %arg9[%c0_29, %c0_30] : memref<16x1xf32, #tpu.memory_space<vmem>>, vector<16x1xf32>
        %54 = arith.subf %50, %53 : vector<16x1xf32>
        %cst_31 = arith.constant 0.000000e+00 : f32
        %55 = vector.broadcast %cst_31 : f32 to vector<16x1xf32>
        %56 = arith.select %52, %54, %55 : vector<16x1xi1>, vector<16x1xf32>
        %c0_32 = arith.constant 0 : index
        %c0_33 = arith.constant 0 : index
        %57 = vector.load %arg6[%c0_32, %c0_33] : memref<16x1xf32, #tpu.memory_space<vmem>>, vector<16x1xf32>
        tpu.vector_store %arg6[%c0_32, %c0_33], %56 {strides = array<i32>} : memref<16x1xf32, #tpu.memory_space<vmem>>, vector<16x1xf32>,
      } else {
      }
    } else {
    }
    %true = arith.constant true
    %5 = arith.xori %2, %true : i1
    %c0_i32_1 = arith.constant 0 : i32
    %6 = arith.cmpi eq, %arg1, %c0_i32_1 : i32
    %7 = arith.andi %5, %6 : i1
    %8 = arith.extui %7 : i1 to i32
    %c0_i32_2 = arith.constant 0 : i32
    %9 = arith.cmpi ne, %8, %c0_i32_2 : i32
    scf.if %9 {
      %cst = arith.constant 0.000000e+00 : f32
      %10 = vector.broadcast %cst : f32 to vector<16x1xf32>
      %c0 = arith.constant 0 : index
      %c0_3 = arith.constant 0 : index
      %11 = vector.load %arg6[%c0, %c0_3] : memref<16x1xf32, #tpu.memory_space<vmem>>, vector<16x1xf32>
      tpu.vector_store %arg6[%c0, %c0_3], %10 {strides = array<i32>} : memref<16x1xf32, #tpu.memory_space<vmem>>, vector<16x1xf32>,
    } else {
    }
    return
  }
  func.func @transform_0(%arg0: i32, %arg1: i32, %arg2: memref<1xi32, #tpu.memory_space<smem>>, %arg3: memref<1xi32, #tpu.memory_space<smem>>) -> (i32, i32) {
    %0 = arith.index_cast %arg0 : i32 to index
    %1 = memref.load %arg3[%0] : memref<1xi32, #tpu.memory_space<smem>>
    %2 = arith.index_cast %arg0 : i32 to index
    %3 = memref.load %arg2[%2] : memref<1xi32, #tpu.memory_space<smem>>
    %4 = arith.muli %arg1, %1 : i32
    %c1_i32 = arith.constant 1 : i32
    %5 = arith.subi %c1_i32, %1 : i32
    %c0_i32 = arith.constant 0 : i32
    %6 = arith.muli %c0_i32, %5 : i32
    %7 = arith.addi %4, %6 : i32
    %c0_i32_0 = arith.constant 0 : i32
    return %3, %7 : i32, i32
  }
  func.func @transform_1(%arg0: i32, %arg1: i32, %arg2: memref<1xi32, #tpu.memory_space<smem>>, %arg3: memref<1xi32, #tpu.memory_space<smem>>) -> (i32, i32) {
    %c0_i32 = arith.constant 0 : i32
    %c0_i32_0 = arith.constant 0 : i32
    return %arg0, %c0_i32 : i32, i32
  }
  func.func @transform_2(%arg0: i32, %arg1: i32, %arg2: memref<1xi32, #tpu.memory_space<smem>>, %arg3: memref<1xi32, #tpu.memory_space<smem>>) -> (i32, i32) {
    %c0_i32 = arith.constant 0 : i32
    %c0_i32_0 = arith.constant 0 : i32
    return %arg0, %c0_i32 : i32, i32
  }
}

</mosaic_0001>

<bundles_post_ra>
// kernel: tpu_custom_call.1
= control target key start
LH: loop header
LB: loop body
LE: loop exit
PB: predicated region body
PF: predicated region fallthrough
CT: control target
= control target key end

     0   :  { %s301_s0 = inlined_call_operand.<no memory space> [shape: s32[1], index: 0, kind: input, shape index: {}]   ;;  %s302_s1 = inlined_call_operand.<no memory space> [shape: s32[1], index: 1, kind: input, shape index: {}]   ;;  %s303_s3 = inlined_call_operand.vmem [shape: s32[16,1], index: 3, kind: input, shape index: {}]   ;;  %s304_s4 = inlined_call_operand.vmem [shape: f32[16,1], index: 4, kind: output, shape index: {}]   ;;  %s305_s2 = inlined_call_operand.vmem [shape: f32[16,128], index: 2, kind: input, shape index: {}]  }
   0x1   :  { %s192_s17 = sshll.u32 %s301_s0, 1  ;;  %p194_p1 = scmp.eq.s32.totalorder %s302_s1, 0 }
   0x2   :  { %p45_p0 = scmp.lt.s32.totalorder %s192_s17, 1  ;;  %vm65_vm0 = vcmask (!%p194_p1), 7168   ;;  %v215_v2 = vmov (!%p194_p1), -1e+30   ;;  %v216_v3 = vmov (!%p194_p1), 0   ;;  %v217_v4 = vmov (!%p194_p1), 0.0  }
   0x3   :  { %60 = sbr.rel (%p194_p1) target bundleno = 470 (0x1d6), region = 13  ;;  %66 = vst.msk [vmem:[#allocation2] sm:$0xff] (!%p194_p1), %vm65_vm0, %v215_v2  ;;  %67 = vst.msk [vmem:[#allocation2 + $0x8] sm:$0xff] (!%p194_p1), %vm65_vm0, %v215_v2  ;;  %201 = vset.pattern.permute.xlu1 (!%p194_p1), %v216_v3  ;;  %202 = vset.pattern.permute.xlu0 (!%p194_p1), %v216_v3  ;;  %v266_v5 = vld [vmem:[%s303_s3] sm:$0xff] (!%p194_p1)  ;;  %v274_v14 = vld [vmem:[%s303_s3 + $0x8] sm:$0xff] (!%p194_p1)  ;;  %v76_v15 = vlaneseq (!%p194_p1) }
   0x4   :  { %s307_s17 = smov (!%p45_p0, %s192_s17), 1  ;;  %68 = vst.msk [vmem:[#allocation3] sm:$0xff] (!%p194_p1), %vm65_vm0, %v217_v4  ;;  %69 = vst.msk [vmem:[#allocation3 + $0x8] sm:$0xff] (!%p194_p1), %vm65_vm0, %v217_v4  ;;  %vm160_vm3 = vcmp.ne.s32.totalorder (!%p194_p1), %v266_v5, 4294967295  ;;  %vm161_vm4 = vcmp.ne.s32.totalorder (!%p194_p1), %v274_v14, 4294967295 }
   0x5   :  { %s193_s18 = sshll.u32 %s307_s17, 3  ;;  %70 = vst.msk [vmem:[#allocation4] sm:$0xff] (!%p194_p1), %vm65_vm0, %v217_v4  ;;  %71 = vst.msk [vmem:[#allocation4 + $0x8] sm:$0xff] (!%p194_p1), %vm65_vm0, %v217_v4  ;;  %v77_v16 = vand.u32 (!%p194_p1), 127, %v76_v15 }
   0x6   :  { %s51_s21 = scalar_lea.vmem %s305_s2, %s193_s18 }
   0x7   :  { %v72_v0 = vld [vmem:[%s51_s21] sm:$0xff] (!%p194_p1)  ;;  %v73_v1 = vld [vmem:[%s51_s21 + $0x8] sm:$0xff] (!%p194_p1) }
   0x8   :  { %103 = vmax.xlane.f32.xlu0 (!%p194_p1), %v72_v0 }
   0xa   :  { %v107_v6 = vld [vmem:[#allocation2] sm:$0xff]  ;;  %v108_v9 = vld [vmem:[#allocation2 + $0x8] sm:$0xff] }
   0xb   :  { %v111_v35 = vld [vmem:[#allocation3] sm:$0xff]  ;;  %v112_v39 = vld [vmem:[#allocation3 + $0x8] sm:$0xff] }
   0xc   :  { %105 = vmax.xlane.f32.xlu0 %v73_v1  ;;  %v82_v30 = vld [vmem:[#allocation4] sm:$0xff]  ;;  %v83_v44 = vld [vmem:[#allocation4 + $0x8] sm:$0xff] }
  0x22   :  { %85 = vperm.xlu0 %202, %v266_v5  }
  0x95   :  { %v104_v7 = vpop.xlane.xlu0 %103 }
  0x96   :  { %v109_v8 = vmax.f32 %v107_v6, %v104_v7 }
  0x98   :  { %v113_v10 = vsub.f32 %v107_v6, %v109_v8  ;;  %145 = vst.msk [vmem:[#allocation2] sm:$0xff] %vm65_vm0, %v109_v8  ;;  %123 = vperm.xlu1 %201, %v109_v8  }
  0x99   :  { %v106_v11 = vpop.xlane.xlu0 %105 }
  0x9a   :  { %v110_v12 = vmax.f32 %v108_v9, %v106_v11  ;;  %v115_v32 = vmul.f32 1.442695, %v113_v10 }
  0x9c   :  { %v114_v13 = vsub.f32 %v108_v9, %v110_v12  ;;  %146 = vst.msk [vmem:[#allocation2 + $0x8] sm:$0xff] %vm65_vm0, %v110_v12  ;;  %128 = vperm.xlu1 %201, %v110_v12  }
  0x9e   :  { %v117_v33 = vmul.f32 1.442695, %v114_v13 }
  0x9f   :  { %v150_v51 = vld [vmem:[#allocation2] sm:$0xff] }
  0xa0   :  { %88 = vperm.xlu1 %201, %v274_v14  }
  0xa1   :  { %v86_v17 = vpop.permute.xlu0 %85 }
  0xa2   :  { %vm90_vm1 = vcmp.eq.s32.totalorder %v77_v16, %v86_v17 }
  0xa3   :  { %v92_v18 = vsel %vm90_vm1, %v72_v0, 0.0  ;;  %v151_v57 = vld [vmem:[#allocation2 + $0x8] sm:$0xff] }
  0xa4   :  { %94 = vadd.xlane.f32.xlu0 %v92_v18 }
 0x117   :  { %v124_v19 = vpop.permute.xlu1 %123 }
 0x118   :  { %v131_v20 = vsub.f32 %v72_v0, %v124_v19 }
 0x11a   :  { %v133_v21 = vmul.f32 1.442695, %v131_v20 }
 0x11b   :  { %v129_v22 = vpop.permute.xlu1 %128 }
 0x11c   :  { %203 = vpow2.f32 %v133_v21  ;;  %v132_v23 = vsub.f32 %v73_v1, %v129_v22 }
 0x11e   :  { %v135_v24 = vmul.f32 1.442695, %v132_v23 }
 0x11f   :  { %v89_v26 = vpop.permute.xlu1 %88 }
 0x120   :  { %205 = vpow2.f32 %v135_v24  ;;  %vm91_vm2 = vcmp.eq.s32.totalorder %v77_v16, %v89_v26 }
 0x121   :  { %v93_v28 = vsel %vm91_vm2, %v73_v1, 0.0  ;;  %207 = vpow2.f32 %v115_v32 }
 0x122   :  { %209 = vpow2.f32 %v117_v33 }
 0x126   :  { %v204_v25 = vpop.eup %203 }
 0x127   :  { %137 = vadd.xlane.f32.xlu1 %v204_v25 }
 0x12a   :  { %v206_v27 = vpop.eup %205 }
 0x12b   :  { %139 = vadd.xlane.f32.xlu1 %v206_v27  ;;  %v208_v34 = vpop.eup %207 }
 0x12c   :  { %v119_v36 = vmul.f32 %v208_v34, %v111_v35  ;;  %v210_v37 = vpop.eup %209 }
 0x12d   :  { %v120_v41 = vmul.f32 %v210_v37, %v112_v39 }
 0x12f   :  { %96 = vadd.xlane.f32.xlu1 %v93_v28 }
 0x131   :  { %v95_v29 = vpop.xlane.xlu0 %94 }
 0x132   :  { %v98_v31 = vadd.f32 %v95_v29, %v82_v30 }
 0x134   :  { %101 = vst.msk [vmem:[#allocation4] sm:$0xff] %vm65_vm0, %v98_v31 }
 0x13b   :  { %v162_v52 = vld [vmem:[#allocation4] sm:$0xff] }
 0x1b4   :  { %v138_v38 = vpop.xlane.xlu1 %137 }
 0x1b5   :  { %v141_v40 = vadd.f32 %v138_v38, %v119_v36 }
 0x1b7   :  { %143 = vst.msk [vmem:[#allocation3] sm:$0xff] %vm65_vm0, %v141_v40 }
 0x1b8   :  { %v140_v42 = vpop.xlane.xlu1 %139 }
 0x1b9   :  { %v142_v43 = vadd.f32 %v140_v42, %v120_v41 }
 0x1bb   :  { %144 = vst.msk [vmem:[#allocation3 + $0x8] sm:$0xff] %vm65_vm0, %v142_v43 }
 0x1bc   :  { %v97_v45 = vpop.xlane.xlu1 %96 }
 0x1bd   :  { %v99_v46 = vadd.f32 %v97_v45, %v83_v44 }
 0x1be   :  { %v152_v47 = vld [vmem:[#allocation3] sm:$0xff] }
 0x1bf   :  { %211 = vlog2.f32 %v152_v47  ;;  %102 = vst.msk [vmem:[#allocation4 + $0x8] sm:$0xff] %vm65_vm0, %v99_v46 }
 0x1c2   :  { %v153_v48 = vld [vmem:[#allocation3 + $0x8] sm:$0xff] }
 0x1c3   :  { %213 = vlog2.f32 %v153_v48 }
 0x1c6   :  { %v163_v60 = vld [vmem:[#allocation4 + $0x8] sm:$0xff] }
 0x1c9   :  { %v212_v49 = vpop.eup %211 }
 0x1ca   :  { %v155_v50 = vmul.f32 0.6931472, %v212_v49 }
 0x1cc   :  { %v158_v53 = vadd.f32 %v155_v50, %v150_v51 }
 0x1cd   :  { %v214_v54 = vpop.eup %213 }
 0x1ce   :  { %v157_v55 = vmul.f32 0.6931472, %v214_v54  ;;  %v164_v56 = vsub.f32 %v158_v53, %v162_v52 }
 0x1d0   :  { %v159_v58 = vadd.f32 %v157_v55, %v151_v57  ;;  %v166_v59 = vsel %vm160_vm3, %v164_v56, 0.0 }
 0x1d1   :  { %168 = vst.msk [vmem:[%s304_s4] sm:$0xff] %vm65_vm0, %v166_v59 }
 0x1d2   :  { %v165_v61 = vsub.f32 %v159_v58, %v163_v60 }
 0x1d4   :  { %v167_v62 = vsel %vm161_vm4, %v165_v61, 0.0 }
 0x1d5   :  { %169 = vst.msk [vmem:[%s304_s4 + $0x8] sm:$0xff] %vm65_vm0, %v167_v62 }
 0x1d6 PF:  { %175 = sbr.rel (!%p194_p1) target bundleno = 477 (0x1dd), region = 25  ;;  %vm176_vm5 = vcmask (%p194_p1), 7168   ;;  %v218_v63 = vmov (%p194_p1), 0.0  }
 0x1d7   :  { %177 = vst.msk [vmem:[%s304_s4] sm:$0xff] (%p194_p1), %vm176_vm5, %v218_v63  ;;  %178 = vst.msk [vmem:[%s304_s4 + $0x8] sm:$0xff] (%p194_p1), %vm176_vm5, %v218_v63 }
 0x1dd PF:  {}

</bundles_post_ra>
